<compile_context>
chip_gen: v7x
topology: tpu7x:2x2x1
jax: 0.10.0
libtpu: 0.0.40
codegen_flags: <defaults>
</compile_context>

<pallas_src>
import functools

import jax
import jax.numpy as jnp
from jax import lax
from jax.experimental import pallas as pl
from jax.experimental.pallas import tpu as pltpu
import numpy as np


def _csam_kernel(w_ref, s_ref, rm_ref, lm_ref, x_ref, o_ref, xp_ref, *, W):
    # w_ref : SMEM (27,) f32   — flattened 3x3x3 Conv3d weight, index dc*9+dh*3+dw
    # s_ref : SMEM (2,)  f32   — [conv bias, gamma]
    # rm_ref: VMEM (R, 2) f32  — channel-boundary validity per fused row (dc=0 / dc=2)
    # lm_ref: VMEM (8, HW) f32 — lane masks: [w>=1, w<=W-2, h>=1, h<=H-2, 4 corners]
    # x_ref : VMEM (R, HW)     — fused (batch*channel, H*W) tile
    # o_ref : VMEM (R, HW)
    # xp_ref: VMEM (R+16, HW)  — rows-only halo scratch; x lives at rows [8, 8+R)
    R, HW = x_ref.shape

    x = x_ref[...]

    # Channel halo: only rows 7 and 8+R are ever read outside the x block, so
    # zero just those two rows (no full-scratch fill) and store x once,
    # sublane-aligned at row 8.
    zrow = jnp.zeros((1, HW), dtype=jnp.float32)
    xp_ref[7:8, :] = zrow
    xp_ref[8 + R:9 + R, :] = zrow
    xp_ref[8:8 + R, :] = x

    # dc=0 / dc=2 slabs; channel & cross-batch leaks masked once (2 muls total).
    s0 = xp_ref[7:7 + R, :] * rm_ref[:, 0:1]
    s2 = xp_ref[9:9 + R, :] * rm_ref[:, 1:2]

    bias = s_ref[0]
    gamma = s_ref[1]

    # Lane-mask row per (dh, dw); the centre tap (1, 1) needs no mask.
    lane_mask_row = {(1, 0): 0, (1, 2): 1, (0, 1): 2, (2, 1): 3,
                     (0, 0): 4, (0, 2): 5, (2, 0): 6, (2, 2): 7}

    acc = jnp.full((R, HW), bias, dtype=jnp.float32)
    for dh in range(3):
        for dw in range(3):
            # Sum the three dc taps first (unshifted), then one lane roll and
            # at most one mask multiply for the whole (dh, dw) partial.
            u = (w_ref[0 + dh * 3 + dw] * s0
                 + w_ref[9 + dh * 3 + dw] * x
                 + w_ref[18 + dh * 3 + dw] * s2)
            # out[col] = u[col + (dh-1)*W + (dw-1)]  (wrap killed by masks)
            shift = ((1 - dh) * W + (1 - dw)) % HW
            if shift != 0:
                u = pltpu.roll(u, shift, axis=1)
            if (dh, dw) != (1, 1):
                row = lane_mask_row[(dh, dw)]
                u = u * lm_ref[row:row + 1, :]
            acc = acc + u

    # sigmoid(acc) = 1/(1+exp(-acc)) on the EUP: exp + approx reciprocal + one
    # Newton step (~f32 accuracy, no VALU divide).  The clamp keeps exp(-acc)
    # finite so the Newton step can never see inf * 0.
    e = jnp.exp(-jnp.maximum(acc, -60.0))
    d = 1.0 + e
    r = pl.reciprocal(d, approx=True)
    r = r * (2.0 - d * r)

    # out = x * (gamma * sigmoid(conv)) + x, fused into a single pass.
    o_ref[...] = (x * (gamma * r + 1.0)).astype(o_ref.dtype)


def _pick_batch_tile(B, C, HW):
    """Largest batch tile that divides B, keeps the x block <= ~2 MiB, keeps the
    sublane block dim a multiple of 8 (or the full fused dim), and — when
    possible — leaves >= 2 grid steps so both v7x TensorCores get work."""
    per_batch_bytes = C * HW * 4
    cap = max(1, (2 << 20) // max(per_batch_bytes, 1))
    divisors = [bt for bt in range(1, B + 1) if B % bt == 0]
    aligned = [bt for bt in divisors if (bt * C) % 8 == 0 or bt == B]
    fitting = [bt for bt in aligned if bt <= cap]
    multi = [bt for bt in fitting if bt <= B // 2]      # >= 2 grid steps (megacore)
    if multi:
        return max(multi)
    if fitting:
        return max(fitting)
    return min(aligned) if aligned else B


def csam_forward(x, conv_w, conv_b, gamma):
    """x: (B, C, H, W) f32; conv_w: (3,3,3); conv_b: (1,); gamma: (1,)."""
    B, C, H, W = x.shape
    HW = H * W
    x2 = x.reshape(B * C, HW)                           # lane-dense view (free reshape)

    w_flat = conv_w.reshape(27).astype(jnp.float32)
    scalars = jnp.concatenate(
        [conv_b.reshape(1), gamma.reshape(1)]).astype(jnp.float32)

    Bt = _pick_batch_tile(B, C, HW)
    R = Bt * C

    # Tiny 0/1 boundary masks, identical for every tile (precomputed on host).
    c_of_row = np.arange(R) % C
    rowmask = np.stack(
        [c_of_row >= 1, c_of_row <= C - 2], axis=1).astype(np.float32)    # (R, 2)

    w_of = np.arange(HW) % W
    h_of = np.arange(HW) // W
    wm0, wm2 = w_of >= 1, w_of <= W - 2
    hm0, hm2 = h_of >= 1, h_of <= H - 2
    lanemask = np.stack(
        [wm0, wm2, hm0, hm2, hm0 & wm0, hm0 & wm2, hm2 & wm0, hm2 & wm2],
        axis=0).astype(np.float32)                                         # (8, HW)

    kernel = functools.partial(_csam_kernel, W=W)

    out2 = pl.pallas_call(
        kernel,
        out_shape=jax.ShapeDtypeStruct((B * C, HW), x.dtype),
        grid=(B // Bt,),
        in_specs=[
            pl.BlockSpec(memory_space=pltpu.MemorySpace.SMEM),   # conv taps
            pl.BlockSpec(memory_space=pltpu.MemorySpace.SMEM),   # [bias, gamma]
            pl.BlockSpec((R, 2), lambda i: (0, 0)),              # channel masks
            pl.BlockSpec((8, HW), lambda i: (0, 0)),             # lane masks
            pl.BlockSpec((R, HW), lambda i: (i, 0)),             # x tile
        ],
        out_specs=pl.BlockSpec((R, HW), lambda i: (i, 0)),
        scratch_shapes=[pltpu.VMEM((R + 16, HW), jnp.float32)],
        compiler_params=pltpu.CompilerParams(
            dimension_semantics=("parallel",),
            vmem_limit_bytes=32 * 1024 * 1024),
    )(w_flat, scalars, jnp.asarray(rowmask), jnp.asarray(lanemask), x2)

    return out2.reshape(B, C, H, W)


def csam_ref(x, conv_w, conv_b, gamma):
    """Pure-JAX reference matching the PyTorch forward exactly."""
    B, C, H, W = x.shape
    out = x[:, None]                                    # (B, 1, C, H, W)
    out = lax.conv_general_dilated(
        out,
        conv_w[None, None].astype(jnp.float32),         # (O=1, I=1, 3, 3, 3)
        window_strides=(1, 1, 1),
        padding=[(1, 1), (1, 1), (1, 1)],
        dimension_numbers=("NCDHW", "OIDHW", "NCDHW"),
    ) + conv_b.reshape(1, 1, 1, 1, 1)
    out = jax.nn.sigmoid(out) * gamma.reshape(())
    out = out.reshape(B, C, H, W)
    return x * out + x


if __name__ == "__main__":
    key = jax.random.PRNGKey(0)
    kx, kw, kb = jax.random.split(key, 3)

    B, C, H, W = 2, 4, 16, 16
    x = jax.random.normal(kx, (B, C, H, W), dtype=jnp.float32)

    # Conv3d(1,1,3) weight is (1,1,3,3,3) in torch; the 1-sized dims are squeezed.
    conv_w = jax.random.normal(kw, (3, 3, 3), dtype=jnp.float32) * 0.1
    conv_b = jax.random.normal(kb, (1,), dtype=jnp.float32) * 0.1
    # Module __init__ sets gamma = 0 (which would make out == x); use a
    # deterministic nonzero value so the full attention path is exercised.
    gamma = jnp.asarray([0.5], dtype=jnp.float32)

    out = jax.block_until_ready(csam_forward(x, conv_w, conv_b, gamma))
    ref = jax.block_until_ready(csam_ref(x, conv_w, conv_b, gamma))

    assert out.shape == (B, C, H, W) and out.dtype == jnp.float32
    assert np.allclose(np.asarray(out), np.asarray(ref), rtol=1e-5, atol=1e-5)
    print("KERNEL_OK")
</pallas_src>

<mosaic_0001>
module attributes {stable_mosaic.version = 11 : i64} {
  func.func @_csam_kernel(%arg0: i32, %arg1: memref<27xf32, #tpu.memory_space<smem>>, %arg2: memref<2xf32, #tpu.memory_space<smem>>, %arg3: memref<8x2xf32, #tpu.memory_space<vmem>>, %arg4: memref<8x256xf32, #tpu.memory_space<vmem>>, %arg5: memref<8x256xf32, #tpu.memory_space<vmem>>, %arg6: memref<8x256xf32, #tpu.memory_space<vmem>>, %arg7: memref<24x256xf32, #tpu.memory_space<vmem>>) attributes {dimension_semantics = [#tpu.dimension_semantics<parallel>], iteration_bounds = array<i64: 1>, scalar_prefetch = 0 : i64, scratch_operands = 1 : i64, tpu.core_type = #tpu.core_type<tc>, window_params = [{transform_indices = @transform_0, window_bounds = array<i64: 27>}, {transform_indices = @transform_1, window_bounds = array<i64: 2>}, {pipeline_mode = #tpu.pipeline_mode<synchronous>, transform_indices = @transform_2, window_bounds = array<i64: 8, 2>}, {pipeline_mode = #tpu.pipeline_mode<synchronous>, transform_indices = @transform_3, window_bounds = array<i64: 8, 256>}, {transform_indices = @transform_4, window_bounds = array<i64: 8, 256>}, {transform_indices = @transform_5, window_bounds = array<i64: 8, 256>}]} {
    %c0 = arith.constant 0 : index
    %c0_0 = arith.constant 0 : index
    %0 = vector.load %arg5[%c0, %c0_0] : memref<8x256xf32, #tpu.memory_space<vmem>>, vector<8x256xf32>
    %cst = arith.constant 0.000000e+00 : f32
    %1 = vector.broadcast %cst : f32 to vector<1x256xf32>
    %c7 = arith.constant 7 : index
    %c0_1 = arith.constant 0 : index
    %2 = vector.load %arg7[%c7, %c0_1] : memref<24x256xf32, #tpu.memory_space<vmem>>, vector<1x256xf32>
    tpu.vector_store %arg7[%c7, %c0_1], %1 {strides = array<i32>} : memref<24x256xf32, #tpu.memory_space<vmem>>, vector<1x256xf32>,
    %c16 = arith.constant 16 : index
    %c0_2 = arith.constant 0 : index
    %3 = vector.load %arg7[%c16, %c0_2] : memref<24x256xf32, #tpu.memory_space<vmem>>, vector<1x256xf32>
    tpu.vector_store %arg7[%c16, %c0_2], %1 {strides = array<i32>} : memref<24x256xf32, #tpu.memory_space<vmem>>, vector<1x256xf32>,
    %c8 = arith.constant 8 : index
    %c0_3 = arith.constant 0 : index
    %4 = vector.load %arg7[%c8, %c0_3] : memref<24x256xf32, #tpu.memory_space<vmem>>, vector<8x256xf32>
    tpu.vector_store %arg7[%c8, %c0_3], %0 {strides = array<i32>} : memref<24x256xf32, #tpu.memory_space<vmem>>, vector<8x256xf32>,
    %c7_4 = arith.constant 7 : index
    %c0_5 = arith.constant 0 : index
    %5 = vector.load %arg7[%c7_4, %c0_5] : memref<24x256xf32, #tpu.memory_space<vmem>>, vector<8x256xf32>
    %c0_6 = arith.constant 0 : index
    %c0_7 = arith.constant 0 : index
    %6 = vector.load %arg3[%c0_6, %c0_7] : memref<8x2xf32, #tpu.memory_space<vmem>>, vector<8x1xf32>
    %7 = vector.broadcast %6 : vector<8x1xf32> to vector<8x256xf32>
    %8 = arith.mulf %5, %7 : vector<8x256xf32>
    %c9 = arith.constant 9 : index
    %c0_8 = arith.constant 0 : index
    %9 = vector.load %arg7[%c9, %c0_8] : memref<24x256xf32, #tpu.memory_space<vmem>>, vector<8x256xf32>
    %c0_9 = arith.constant 0 : index
    %c1 = arith.constant 1 : index
    %10 = vector.load %arg3[%c0_9, %c1] : memref<8x2xf32, #tpu.memory_space<vmem>>, vector<8x1xf32>
    %11 = vector.broadcast %10 : vector<8x1xf32> to vector<8x256xf32>
    %12 = arith.mulf %9, %11 : vector<8x256xf32>
    %c0_10 = arith.constant 0 : index
    %13 = memref.load %arg2[%c0_10] : memref<2xf32, #tpu.memory_space<smem>>
    %c1_11 = arith.constant 1 : index
    %14 = memref.load %arg2[%c1_11] : memref<2xf32, #tpu.memory_space<smem>>
    %15 = vector.broadcast %13 : f32 to vector<8x256xf32>
    %c0_12 = arith.constant 0 : index
    %16 = memref.load %arg1[%c0_12] : memref<27xf32, #tpu.memory_space<smem>>
    %17 = vector.broadcast %16 : f32 to vector<8x256xf32>
    %18 = arith.mulf %17, %8 : vector<8x256xf32>
    %c9_13 = arith.constant 9 : index
    %19 = memref.load %arg1[%c9_13] : memref<27xf32, #tpu.memory_space<smem>>
    %20 = vector.broadcast %19 : f32 to vector<8x256xf32>
    %21 = arith.mulf %20, %0 : vector<8x256xf32>
    %22 = arith.addf %18, %21 : vector<8x256xf32>
    %c18 = arith.constant 18 : index
    %23 = memref.load %arg1[%c18] : memref<27xf32, #tpu.memory_space<smem>>
    %24 = vector.broadcast %23 : f32 to vector<8x256xf32>
    %25 = arith.mulf %24, %12 : vector<8x256xf32>
    %26 = arith.addf %22, %25 : vector<8x256xf32>
    %c17_i32 = arith.constant 17 : i32
    %27 = tpu.dynamic_rotate %26 by %c17_i32 dim 1 : vector<8x256xf32>, i32 -> vector<8x256xf32>
    %c4 = arith.constant 4 : index
    %c0_14 = arith.constant 0 : index
    %28 = vector.load %arg4[%c4, %c0_14] : memref<8x256xf32, #tpu.memory_space<vmem>>, vector<1x256xf32>
    %29 = vector.broadcast %28 : vector<1x256xf32> to vector<8x256xf32>
    %30 = arith.mulf %27, %29 : vector<8x256xf32>
    %31 = arith.addf %15, %30 : vector<8x256xf32>
    %c1_15 = arith.constant 1 : index
    %32 = memref.load %arg1[%c1_15] : memref<27xf32, #tpu.memory_space<smem>>
    %33 = vector.broadcast %32 : f32 to vector<8x256xf32>
    %34 = arith.mulf %33, %8 : vector<8x256xf32>
    %c10 = arith.constant 10 : index
    %35 = memref.load %arg1[%c10] : memref<27xf32, #tpu.memory_space<smem>>
    %36 = vector.broadcast %35 : f32 to vector<8x256xf32>
    %37 = arith.mulf %36, %0 : vector<8x256xf32>
    %38 = arith.addf %34, %37 : vector<8x256xf32>
    %c19 = arith.constant 19 : index
    %39 = memref.load %arg1[%c19] : memref<27xf32, #tpu.memory_space<smem>>
    %40 = vector.broadcast %39 : f32 to vector<8x256xf32>
    %41 = arith.mulf %40, %12 : vector<8x256xf32>
    %42 = arith.addf %38, %41 : vector<8x256xf32>
    %c16_i32 = arith.constant 16 : i32
    %43 = tpu.dynamic_rotate %42 by %c16_i32 dim 1 : vector<8x256xf32>, i32 -> vector<8x256xf32>
    %c2 = arith.constant 2 : index
    %c0_16 = arith.constant 0 : index
    %44 = vector.load %arg4[%c2, %c0_16] : memref<8x256xf32, #tpu.memory_space<vmem>>, vector<1x256xf32>
    %45 = vector.broadcast %44 : vector<1x256xf32> to vector<8x256xf32>
    %46 = arith.mulf %43, %45 : vector<8x256xf32>
    %47 = arith.addf %31, %46 : vector<8x256xf32>
    %c2_17 = arith.constant 2 : index
    %48 = memref.load %arg1[%c2_17] : memref<27xf32, #tpu.memory_space<smem>>
    %49 = vector.broadcast %48 : f32 to vector<8x256xf32>
    %50 = arith.mulf %49, %8 : vector<8x256xf32>
    %c11 = arith.constant 11 : index
    %51 = memref.load %arg1[%c11] : memref<27xf32, #tpu.memory_space<smem>>
    %52 = vector.broadcast %51 : f32 to vector<8x256xf32>
    %53 = arith.mulf %52, %0 : vector<8x256xf32>
    %54 = arith.addf %50, %53 : vector<8x256xf32>
    %c20 = arith.constant 20 : index
    %55 = memref.load %arg1[%c20] : memref<27xf32, #tpu.memory_space<smem>>
    %56 = vector.broadcast %55 : f32 to vector<8x256xf32>
    %57 = arith.mulf %56, %12 : vector<8x256xf32>
    %58 = arith.addf %54, %57 : vector<8x256xf32>
    %c15_i32 = arith.constant 15 : i32
    %59 = tpu.dynamic_rotate %58 by %c15_i32 dim 1 : vector<8x256xf32>, i32 -> vector<8x256xf32>
    %c5 = arith.constant 5 : index
    %c0_18 = arith.constant 0 : index
    %60 = vector.load %arg4[%c5, %c0_18] : memref<8x256xf32, #tpu.memory_space<vmem>>, vector<1x256xf32>
    %61 = vector.broadcast %60 : vector<1x256xf32> to vector<8x256xf32>
    %62 = arith.mulf %59, %61 : vector<8x256xf32>
    %63 = arith.addf %47, %62 : vector<8x256xf32>
    %c3 = arith.constant 3 : index
    %64 = memref.load %arg1[%c3] : memref<27xf32, #tpu.memory_space<smem>>
    %65 = vector.broadcast %64 : f32 to vector<8x256xf32>
    %66 = arith.mulf %65, %8 : vector<8x256xf32>
    %c12 = arith.constant 12 : index
    %67 = memref.load %arg1[%c12] : memref<27xf32, #tpu.memory_space<smem>>
    %68 = vector.broadcast %67 : f32 to vector<8x256xf32>
    %69 = arith.mulf %68, %0 : vector<8x256xf32>
    %70 = arith.addf %66, %69 : vector<8x256xf32>
    %c21 = arith.constant 21 : index
    %71 = memref.load %arg1[%c21] : memref<27xf32, #tpu.memory_space<smem>>
    %72 = vector.broadcast %71 : f32 to vector<8x256xf32>
    %73 = arith.mulf %72, %12 : vector<8x256xf32>
    %74 = arith.addf %70, %73 : vector<8x256xf32>
    %c1_i32 = arith.constant 1 : i32
    %75 = tpu.dynamic_rotate %74 by %c1_i32 dim 1 : vector<8x256xf32>, i32 -> vector<8x256xf32>
    %c0_19 = arith.constant 0 : index
    %c0_20 = arith.constant 0 : index
    %76 = vector.load %arg4[%c0_19, %c0_20] : memref<8x256xf32, #tpu.memory_space<vmem>>, vector<1x256xf32>
    %77 = vector.broadcast %76 : vector<1x256xf32> to vector<8x256xf32>
    %78 = arith.mulf %75, %77 : vector<8x256xf32>
    %79 = arith.addf %63, %78 : vector<8x256xf32>
    %c4_21 = arith.constant 4 : index
    %80 = memref.load %arg1[%c4_21] : memref<27xf32, #tpu.memory_space<smem>>
    %81 = vector.broadcast %80 : f32 to vector<8x256xf32>
    %82 = arith.mulf %81, %8 : vector<8x256xf32>
    %c13 = arith.constant 13 : index
    %83 = memref.load %arg1[%c13] : memref<27xf32, #tpu.memory_space<smem>>
    %84 = vector.broadcast %83 : f32 to vector<8x256xf32>
    %85 = arith.mulf %84, %0 : vector<8x256xf32>
    %86 = arith.addf %82, %85 : vector<8x256xf32>
    %c22 = arith.constant 22 : index
    %87 = memref.load %arg1[%c22] : memref<27xf32, #tpu.memory_space<smem>>
    %88 = vector.broadcast %87 : f32 to vector<8x256xf32>
    %89 = arith.mulf %88, %12 : vector<8x256xf32>
    %90 = arith.addf %86, %89 : vector<8x256xf32>
    %91 = arith.addf %79, %90 : vector<8x256xf32>
    %c5_22 = arith.constant 5 : index
    %92 = memref.load %arg1[%c5_22] : memref<27xf32, #tpu.memory_space<smem>>
    %93 = vector.broadcast %92 : f32 to vector<8x256xf32>
    %94 = arith.mulf %93, %8 : vector<8x256xf32>
    %c14 = arith.constant 14 : index
    %95 = memref.load %arg1[%c14] : memref<27xf32, #tpu.memory_space<smem>>
    %96 = vector.broadcast %95 : f32 to vector<8x256xf32>
    %97 = arith.mulf %96, %0 : vector<8x256xf32>
    %98 = arith.addf %94, %97 : vector<8x256xf32>
    %c23 = arith.constant 23 : index
    %99 = memref.load %arg1[%c23] : memref<27xf32, #tpu.memory_space<smem>>
    %100 = vector.broadcast %99 : f32 to vector<8x256xf32>
    %101 = arith.mulf %100, %12 : vector<8x256xf32>
    %102 = arith.addf %98, %101 : vector<8x256xf32>
    %c255_i32 = arith.constant 255 : i32
    %103 = tpu.dynamic_rotate %102 by %c255_i32 dim 1 : vector<8x256xf32>, i32 -> vector<8x256xf32>
    %c1_23 = arith.constant 1 : index
    %c0_24 = arith.constant 0 : index
    %104 = vector.load %arg4[%c1_23, %c0_24] : memref<8x256xf32, #tpu.memory_space<vmem>>, vector<1x256xf32>
    %105 = vector.broadcast %104 : vector<1x256xf32> to vector<8x256xf32>
    %106 = arith.mulf %103, %105 : vector<8x256xf32>
    %107 = arith.addf %91, %106 : vector<8x256xf32>
    %c6 = arith.constant 6 : index
    %108 = memref.load %arg1[%c6] : memref<27xf32, #tpu.memory_space<smem>>
    %109 = vector.broadcast %108 : f32 to vector<8x256xf32>
    %110 = arith.mulf %109, %8 : vector<8x256xf32>
    %c15 = arith.constant 15 : index
    %111 = memref.load %arg1[%c15] : memref<27xf32, #tpu.memory_space<smem>>
    %112 = vector.broadcast %111 : f32 to vector<8x256xf32>
    %113 = arith.mulf %112, %0 : vector<8x256xf32>
    %114 = arith.addf %110, %113 : vector<8x256xf32>
    %c24 = arith.constant 24 : index
    %115 = memref.load %arg1[%c24] : memref<27xf32, #tpu.memory_space<smem>>
    %116 = vector.broadcast %115 : f32 to vector<8x256xf32>
    %117 = arith.mulf %116, %12 : vector<8x256xf32>
    %118 = arith.addf %114, %117 : vector<8x256xf32>
    %c241_i32 = arith.constant 241 : i32
    %119 = tpu.dynamic_rotate %118 by %c241_i32 dim 1 : vector<8x256xf32>, i32 -> vector<8x256xf32>
    %c6_25 = arith.constant 6 : index
    %c0_26 = arith.constant 0 : index
    %120 = vector.load %arg4[%c6_25, %c0_26] : memref<8x256xf32, #tpu.memory_space<vmem>>, vector<1x256xf32>
    %121 = vector.broadcast %120 : vector<1x256xf32> to vector<8x256xf32>
    %122 = arith.mulf %119, %121 : vector<8x256xf32>
    %123 = arith.addf %107, %122 : vector<8x256xf32>
    %c7_27 = arith.constant 7 : index
    %124 = memref.load %arg1[%c7_27] : memref<27xf32, #tpu.memory_space<smem>>
    %125 = vector.broadcast %124 : f32 to vector<8x256xf32>
    %126 = arith.mulf %125, %8 : vector<8x256xf32>
    %c16_28 = arith.constant 16 : index
    %127 = memref.load %arg1[%c16_28] : memref<27xf32, #tpu.memory_space<smem>>
    %128 = vector.broadcast %127 : f32 to vector<8x256xf32>
    %129 = arith.mulf %128, %0 : vector<8x256xf32>
    %130 = arith.addf %126, %129 : vector<8x256xf32>
    %c25 = arith.constant 25 : index
    %131 = memref.load %arg1[%c25] : memref<27xf32, #tpu.memory_space<smem>>
    %132 = vector.broadcast %131 : f32 to vector<8x256xf32>
    %133 = arith.mulf %132, %12 : vector<8x256xf32>
    %134 = arith.addf %130, %133 : vector<8x256xf32>
    %c240_i32 = arith.constant 240 : i32
    %135 = tpu.dynamic_rotate %134 by %c240_i32 dim 1 : vector<8x256xf32>, i32 -> vector<8x256xf32>
    %c3_29 = arith.constant 3 : index
    %c0_30 = arith.constant 0 : index
    %136 = vector.load %arg4[%c3_29, %c0_30] : memref<8x256xf32, #tpu.memory_space<vmem>>, vector<1x256xf32>
    %137 = vector.broadcast %136 : vector<1x256xf32> to vector<8x256xf32>
    %138 = arith.mulf %135, %137 : vector<8x256xf32>
    %139 = arith.addf %123, %138 : vector<8x256xf32>
    %c8_31 = arith.constant 8 : index
    %140 = memref.load %arg1[%c8_31] : memref<27xf32, #tpu.memory_space<smem>>
    %141 = vector.broadcast %140 : f32 to vector<8x256xf32>
    %142 = arith.mulf %141, %8 : vector<8x256xf32>
    %c17 = arith.constant 17 : index
    %143 = memref.load %arg1[%c17] : memref<27xf32, #tpu.memory_space<smem>>
    %144 = vector.broadcast %143 : f32 to vector<8x256xf32>
    %145 = arith.mulf %144, %0 : vector<8x256xf32>
    %146 = arith.addf %142, %145 : vector<8x256xf32>
    %c26 = arith.constant 26 : index
    %147 = memref.load %arg1[%c26] : memref<27xf32, #tpu.memory_space<smem>>
    %148 = vector.broadcast %147 : f32 to vector<8x256xf32>
    %149 = arith.mulf %148, %12 : vector<8x256xf32>
    %150 = arith.addf %146, %149 : vector<8x256xf32>
    %c239_i32 = arith.constant 239 : i32
    %151 = tpu.dynamic_rotate %150 by %c239_i32 dim 1 : vector<8x256xf32>, i32 -> vector<8x256xf32>
    %c7_32 = arith.constant 7 : index
    %c0_33 = arith.constant 0 : index
    %152 = vector.load %arg4[%c7_32, %c0_33] : memref<8x256xf32, #tpu.memory_space<vmem>>, vector<1x256xf32>
    %153 = vector.broadcast %152 : vector<1x256xf32> to vector<8x256xf32>
    %154 = arith.mulf %151, %153 : vector<8x256xf32>
    %155 = arith.addf %139, %154 : vector<8x256xf32>
    %cst_34 = arith.constant -6.000000e+01 : f32
    %156 = vector.broadcast %cst_34 : f32 to vector<8x256xf32>
    %157 = arith.maximumf %155, %156 : vector<8x256xf32>
    %cst_35 = arith.constant 0.000000e+00 : f32
    %158 = vector.broadcast %cst_35 : f32 to vector<8x256xf32>
    %159 = arith.subf %158, %157 : vector<8x256xf32>
    %160 = math.exp %159 : vector<8x256xf32>
    %cst_36 = arith.constant 1.000000e+00 : f32
    %161 = vector.broadcast %cst_36 : f32 to vector<8x256xf32>
    %162 = arith.addf %161, %160 : vector<8x256xf32>
    %163 = tpu.reciprocal %162 {approx = true} : vector<8x256xf32> -> vector<8x256xf32>
    %164 = arith.mulf %162, %163 : vector<8x256xf32>
    %cst_37 = arith.constant 2.000000e+00 : f32
    %165 = vector.broadcast %cst_37 : f32 to vector<8x256xf32>
    %166 = arith.subf %165, %164 : vector<8x256xf32>
    %167 = arith.mulf %163, %166 : vector<8x256xf32>
    %168 = vector.broadcast %14 : f32 to vector<8x256xf32>
    %169 = arith.mulf %168, %167 : vector<8x256xf32>
    %cst_38 = arith.constant 1.000000e+00 : f32
    %170 = vector.broadcast %cst_38 : f32 to vector<8x256xf32>
    %171 = arith.addf %169, %170 : vector<8x256xf32>
    %172 = arith.mulf %0, %171 : vector<8x256xf32>
    %c0_39 = arith.constant 0 : index
    %c0_40 = arith.constant 0 : index
    %173 = vector.load %arg6[%c0_39, %c0_40] : memref<8x256xf32, #tpu.memory_space<vmem>>, vector<8x256xf32>
    tpu.vector_store %arg6[%c0_39, %c0_40], %172 {strides = array<i32>} : memref<8x256xf32, #tpu.memory_space<vmem>>, vector<8x256xf32>,
    return
  }
  func.func @transform_0(%arg0: i32) -> i32 {
    %c0_i32 = arith.constant 0 : i32
    %c0_i32_0 = arith.constant 0 : i32
    return %c0_i32 : i32
  }
  func.func @transform_1(%arg0: i32) -> i32 {
    %c0_i32 = arith.constant 0 : i32
    %c0_i32_0 = arith.constant 0 : i32
    return %c0_i32 : i32
  }
  func.func @transform_2(%arg0: i32) -> (i32, i32) {
    %c0_i32 = arith.constant 0 : i32
    %c0_i32_0 = arith.constant 0 : i32
    %c0_i32_1 = arith.constant 0 : i32
    return %c0_i32, %c0_i32_0 : i32, i32
  }
  func.func @transform_3(%arg0: i32) -> (i32, i32) {
    %c0_i32 = arith.constant 0 : i32
    %c0_i32_0 = arith.constant 0 : i32
    %c0_i32_1 = arith.constant 0 : i32
    return %c0_i32, %c0_i32_0 : i32, i32
  }
  func.func @transform_4(%arg0: i32) -> (i32, i32) {
    %c0_i32 = arith.constant 0 : i32
    %c0_i32_0 = arith.constant 0 : i32
    return %arg0, %c0_i32 : i32, i32
  }
  func.func @transform_5(%arg0: i32) -> (i32, i32) {
    %c0_i32 = arith.constant 0 : i32
    %c0_i32_0 = arith.constant 0 : i32
    return %arg0, %c0_i32 : i32, i32
  }
}

</mosaic_0001>

<bundles_post_ra>
// kernel: tpu_custom_call.1
= control target key start
LH: loop header
LB: loop body
LE: loop exit
PB: predicated region body
PF: predicated region fallthrough
CT: control target
= control target key end

     0   :  { %10 = vsyncpa [#allocation6], 0  ;;  %s1565_s0 = inlined_call_operand.vmem [shape: f32[27], index: 0, kind: input, shape index: {}]   ;;  %s1566_s1 = inlined_call_operand.vmem [shape: f32[2], index: 1, kind: input, shape index: {}]   ;;  %s1567_s2 = inlined_call_operand.vmem [shape: f32[8,2], index: 2, kind: input, shape index: {}]   ;;  %s1568_s3 = inlined_call_operand.vmem [shape: f32[8,256], index: 3, kind: input, shape index: {}]   ;;  %s1569_s4 = inlined_call_operand.hbm [shape: f32[8,256], index: 4, kind: input, shape index: {}]   ;;  %s1570_s5 = inlined_call_operand.hbm [shape: f32[8,256], index: 5, kind: output, shape index: {}]  }
   0x1   :  { %11 = vsyncpa [#allocation8], 0 }
   0x2   :  { %12 = vsyncpa [#allocation4], 0 }
   0x3   :  { %13 = vsyncpa [#allocation5], 0  ;;  %s20_s20 = sshll.u32 %s1565_s0, 4  ;;  %s30_s23 = sshll.u32 %s1566_s1, 4  ;;  %s21_s20 = int_to_ptr.vmem [resolvable:$true] %s20_s20  ;;  %s31_s23 = int_to_ptr.vmem [resolvable:$true] %s30_s23 }
   0x4   :  { %s910_s24 = scalar_lea.vmem %s21_s20, 16  ;;  %p915_p1 = scmp.lt.s32.totalorder %s21_s20, %s21_s20 }
   0x5   :  { %p911_p0 = scmp.ne.s32.totalorder %s21_s20, %s910_s24  ;;  %p916_p2 = scmp.lt.s32.totalorder %s910_s24, %s910_s24 }
   0x7   :  { %p917_p3 = por %p916_p2, %p915_p1 }
   0x9   :  { %p918_p4 = pnand %p917_p3, %p911_p0 }
   0xb   :  { %921 = shalt.err (!%p918_p4)
}
   0xc   :  { %s986_s25 = smov [#allocation3]   ;;  %s922_s26 = scalar_lea.vmem %s31_s23, 16 }
   0xd   :  { %23 = dma.vmem_to_smem %s21_s20, 16, %s986_s25, [#allocation6]  }
   0xe   :  { %p923_p5 = scmp.ne.s32.totalorder %s31_s23, %s922_s26  ;;  %p927_p6 = scmp.lt.s32.totalorder %s31_s23, %s31_s23 }
   0xf   :  { %p928_p7 = scmp.lt.s32.totalorder %s922_s26, %s922_s26 }
  0x11   :  { %p929_p8 = por %p928_p7, %p927_p6 }
  0x13   :  { %p930_p9 = pnand %p929_p8, %p923_p5 }
  0x15   :  { %933 = shalt.err (!%p930_p9)
}
  0x16   :  { %s987_s0 = smov [#allocation7]   ;;  %s988_s1 = smov [#allocation9]  }
  0x17   :  { %33 = dma.vmem_to_smem %s31_s23, 16, %s987_s0, [#allocation8]  }
  0x18   :  { %s44_s27 = sshll.u32 %s988_s1, 4  ;;  %s934_s30 = scalar_lea.hbm %s1569_s4, 256  ;;  %s45_s27 = int_to_ptr.vmem [resolvable:$true] %s44_s27 }
  0x19   :  { %p935_p10 = scmp.ne.s32.totalorder %s1569_s4, %s934_s30  ;;  %p938_p11 = scmp.lt.u32.totalorder %s934_s30, %s1569_s4 }
  0x1b   :  { %p940_p12 = pnand %p938_p11, %p935_p10 }
  0x1d   :  { %943 = shalt.err (!%p940_p12)
}
  0x1e   :  { %s944_s10 = scalar_lea.vmem %s45_s27, 256  ;;  %p949_p0 = scmp.lt.s32.totalorder %s45_s27, %s45_s27 }
  0x1f   :  { %p945_p13 = scmp.ne.s32.totalorder %s45_s27, %s944_s10  ;;  %p950_p1 = scmp.lt.s32.totalorder %s944_s10, %s944_s10 }
  0x21   :  { %p951_p2 = por %p950_p1, %p949_p0 }
  0x23   :  { %p952_p3 = pnand %p951_p2, %p945_p13 }
  0x25   :  { %955 = shalt.err (!%p952_p3)
}
  0x26   :  { %47 = dma.hbm_to_vmem [thread:$0]  %s1569_s4, 256, %s45_s27, [#allocation4]  }
  0x27   :  { %978 = dma.done.wait [#allocation6], 16  }
  0x28   :  { %979 = vsyncadd [#allocation6], 4294967280 }
  0x29   :  { %980 = dma.done.wait [#allocation8], 16  }
  0x2a   :  { %981 = vsyncadd [#allocation8], 4294967280 }
  0x2b   :  { %982 = dma.done.wait [#allocation4], 256  }
  0x2c   :  { %983 = vsyncadd [#allocation4], 4294967040 }
  0x2d   :  { %57 = sfence }
  0x2e   :  { %v76_v0 = vld [vmem:[%s1567_s2] sm:$0xff]  ;;  %v1052_v1 = vld [vmem:[#allocation9] sm:$0xff]  ;;  %v1054_v2 = vld [vmem:[#allocation9 + $0x8] sm:$0xff]  ;;  %v1571_v3 = vlaneseq  ;;  %v989_v4 = vmov 1   ;;  %v990_v5 = vmov 0.0   ;;  %v991_v6 = vmov 0  }
  0x2f   :  { %1582 = vst [vmem:[#allocation15_spill] sm:$0xff] %v1052_v1  ;;  %1583 = vst [vmem:[#allocation16_spill] sm:$0xff] %v1054_v2  ;;  %897 = vset.pattern.permute.xlu0 %v989_v4  ;;  %s1059_s2 = sld [smem:[#allocation3 + $0xa]]  ;;  %s849_s4 = sld [smem:[#allocation3 + $0x9]]  ;;  %vm133_vm1 = vcmask 1045504   ;;  %vm152_vm2 = vcmask 1040384  }
  0x30   :  { %70 = vst [vmem:[#allocation2 + $0x10] sm:$0xff] %v1052_v1  ;;  %71 = vst [vmem:[#allocation2 + $0x18] sm:$0xff] %v1054_v2  ;;  %92 = vperm.xlu0 %897, %v76_v0   ;;  %vm62_vm0 = vcmp.lt.s32.totalorder %v1571_v3, 256  ;;  %s1061_s15 = sld [smem:[#allocation3 + $0xb]]  ;;  %s1063_s16 = sld [smem:[#allocation3 + $0xc]] }
  0x31   :  { %68 = vst.msk [vmem:[#allocation2 + $0x20] ss:$8 sm:$0x3] %vm62_vm0, %v990_v5  ;;  %65 = vst.msk [vmem:[#allocation2 + $0x7] ss:$8 sm:$0x3] %vm62_vm0, %v990_v5 }
  0x32   :  { %s854_s17 = sld [smem:[#allocation3 + $0x13]]  ;;  %s850_s18 = sld [smem:[#allocation3 + $0x12]] }
  0x33   :  { %s1065_s19 = sld [smem:[#allocation3 + $0xe]]  ;;  %s858_s20 = sld [smem:[#allocation3 + $0x14]] }
  0x34   :  { %898 = vset.pattern.permute.xlu0 %v991_v6  ;;  %s1067_s21 = sld [smem:[#allocation3 + $0xf]]  ;;  %s852_s22 = sld [smem:[#allocation3 + $0x1]] }
  0x35   :  { %79 = vperm.xlu0 %898, %v76_v0   ;;  %s103_s23 = sld [smem:[#allocation3]]  ;;  %s856_s24 = sld [smem:[#allocation3 + $0x2]]  ;;  %v194_v7 = vstv %s1059_s2  ;;  %v110_v8 = vstv %s849_s4 }
  0x36   :  { %s1070_s25 = sld [smem:[#allocation3 + $0x10]]  ;;  %v274_v9 = vstv %s1061_s15  ;;  %s1073_s26 = sld [smem:[#allocation3 + $0x3]]  ;;  %v354_v10 = vstv %s1063_s16  ;;  %v1083_v11 = vmul.f32 %v194_v7, %v1054_v2  ;;  %v1086_v12 = vmul.f32 %v110_v8, %v1052_v1 }
  0x37   :  { %s1075_s0 = sld [smem:[#allocation3 + $0x15]]  ;;  %s1078_s1 = sld [smem:[#allocation3 + $0x17]]  ;;  %v1093_v14 = vmul.f32 %v274_v9, %v1054_v2  ;;  %v1103_v17 = vmul.f32 %v110_v8, %v1054_v2  ;;  %v1106_v18 = vmul.f32 %v354_v10, %v1054_v2  ;;  %v1116_v23 = vmul.f32 %v194_v7, %v1052_v1  ;;  %v87_v44 = vld [vmem:[#allocation2 + $0x10] sm:$0xfe]  ;;  %v88_v50 = vld [vmem:[#allocation2 + $0x18] sm:$0xfe] }
  0x38   :  { %s1080_s27 = sld [smem:[#allocation3 + $0x11]]  ;;  %s1088_s28 = sld [smem:[#allocation3 + $0x5]]  ;;  %v1090_v13 = vstv %s854_s17  ;;  %v1100_v16 = vstv %s850_s18  ;;  %v200_v24 = vrot.slane %v1083_v11, 1  ;;  %v115_v25 = vrot.slane %v1086_v12, 1  ;;  %v89_v51 = vld [vmem:[#allocation2 + $0x20] sm:$0x1] }
  0x39   :  { %899 = vset.pattern.permute.xlu0 %v989_v4  ;;  %v491_v15 = vstv %s1065_s19  ;;  %s1096_s29 = sld [smem:[#allocation3 + $0x6]]  ;;  %s1098_s30 = sld [smem:[#allocation3 + $0x18]]  ;;  %v1113_v22 = vstv %s858_s20  ;;  %v1135_v29 = vmul.f32 %v274_v9, %v1052_v1  ;;  %v1154_v38 = vmul.f32 %v354_v10, %v1052_v1  ;;  %v90_v52 = vld [vmem:[#allocation2 + $0x28] sm:$0x1]  ;;  %v74_v8 = vld [vmem:[#allocation2 + $0x10] sm:$0x7f] }
  0x3a   :  { %v571_v19 = vstv %s1067_s21  ;;  %v1109_v20 = vstv %s852_s22  ;;  %s1118_s6 = sld [smem:[#allocation3 + $0x7]]  ;;  %s1120_s7 = sld [smem:[#allocation3 + $0x19]]  ;;  %v1127_v27 = vmul.f32 %v491_v15, %v1054_v2  ;;  %v1165_v43 = vmul.f32 %v491_v15, %v1052_v1 }
  0x3b   :  { %v1111_v21 = vstv %s103_s23  ;;  %v1124_v26 = vstv %s856_s24  ;;  %s1129_s8 = sld [smem:[#allocation3 + $0x8]]  ;;  %s1131_s9 = sld [smem:[#allocation3 + $0x1a]]  ;;  %v1138_v30 = vmul.f32 %v571_v19, %v1054_v2  ;;  %v1179_v54 = vmul.f32 %v571_v19, %v1052_v1 }
  0x3c   :  { %v651_v31 = vstv %s1070_s25  ;;  %v1143_v33 = vstv %s1073_s26  ;;  %s1253_s10 = sld [smem:[#allocation3 + $0xd]]  ;;  %s992_s11 = smov 16  }
  0x3d   :  { %v1147_v35 = vstv %s1075_s0  ;;  %v1151_v37 = vstv %s1078_s1  ;;  %v1162_v42 = vmul.f32 %v651_v31, %v1054_v2  ;;  %1584 = vst [vmem:[#allocation17_spill] sm:$0xff] %v1179_v54  ;;  %v1182_v55 = vmul.f32 %v651_v31, %v1052_v1  ;;  %s993_s12 = smov 17   ;;  %s994_s13 = smov 15  }
  0x3e   :  { %v731_v39 = vstv %s1080_s27  ;;  %v1158_v40 = vstv %s1088_s28  ;;  %s995_s14 = smov 1   ;;  %s996_s2 = smov 127  }
  0x3f   :  { %v1169_v46 = vstv %s1096_s29  ;;  %v1173_v48 = vstv %s1098_s30  ;;  %v1176_v53 = vmul.f32 %v731_v39, %v1054_v2  ;;  %1585 = vst [vmem:[#allocation18_spill] sm:$0xff] %v1182_v55  ;;  %v1185_v56 = vmul.f32 %v731_v39, %v1052_v1  ;;  %v72_v39 = vld [vmem:[#allocation2] sm:$0x80]  ;;  %s997_s4 = smov 113   ;;  %s998_s15 = smov 112  }
  0x40   :  { %v1189_v59 = vstv %s1118_s6  ;;  %v1192_v60 = vstv %s1120_s7  ;;  %s1438_s16 = sld [smem:[#allocation3 + $0x16]]  ;;  %s863_s17 = sld [smem:[#allocation3 + $0x4]] }
  0x41   :  { %1586 = vst [vmem:[#allocation19_spill] sm:$0xff] %v1185_v56  ;;  %v1197_v63 = vstv %s1129_s8  ;;  %v1200_v0 = vstv %s1131_s9  ;;  %s999_s18 = smov 111   ;;  %s1496_s19 = sld [smem:[#allocation7]] }
  0x42   :  { %1587 = vst [vmem:[#allocation20_spill] sm:$0xff] %v1200_v0  ;;  %s1000_s9 = smov [#allocation10]  }
  0xaf   :  { %v93_v49 = vpop.permute.xlu0 %92 }
  0xb0   :  { %v94_v57 = vrot.slane %v93_v49, 7  ;;  %v73_v49 = vld [vmem:[#allocation2 + $0x8] sm:$0x80] }
  0xb2   :  { %v1202_v4 = vmul.f32 %v94_v57, %v87_v44  ;;  %v1204_v5 = vmul.f32 %v94_v57, %v88_v50  ;;  %v1206_v6 = vmul.f32 %v94_v57, %v89_v51  ;;  %v1208_v7 = vmul.f32 %v94_v57, %v90_v52  ;;  %v75_v44 = vld [vmem:[#allocation2 + $0x18] sm:$0x7f] }
  0xb4   :  { %v80_v31 = vpop.permute.xlu0 %79  ;;  %v210_v50 = vmul.f32 %v1090_v13, %v1204_v5  ;;  %v212_v51 = vmul.f32 %v1090_v13, %v1208_v7  ;;  %v125_v52 = vmul.f32 %v1100_v16, %v1202_v4  ;;  %v127_v57 = vmul.f32 %v1100_v16, %v1206_v6 }
  0xb5   :  { %v81_v3 = vrot.slane %v80_v31, 1  ;;  %v290_v19 = vmul.f32 %v1113_v22, %v1204_v5  ;;  %v292_v15 = vmul.f32 %v1113_v22, %v1208_v7  ;;  %v126_v10 = vmul.f32 %v1100_v16, %v1204_v5 }
  0xb6   :  { %v218_v9 = vrot.slane %v210_v50, 2  ;;  %v221_v62 = vrot.slane %v212_v51, 2  ;;  %v134_v61 = vrot.slane %v125_v52, 2  ;;  %v136_v58 = vrot.slane %v127_v57, 2 }
  0xb7   :  { %v1228_v47 = vmul.f32 %v81_v3, %v72_v39  ;;  %v1230_v45 = vmul.f32 %v81_v3, %v73_v49  ;;  %v1232_v41 = vmul.f32 %v81_v3, %v74_v8  ;;  %v1234_v31 = vmul.f32 %v81_v3, %v75_v44 }
  0xb8   :  { %v222_v36 = vsel %vm133_vm1, %v218_v9, %v221_v62  ;;  %v137_v34 = vsel %vm133_vm1, %v134_v61, %v136_v58  ;;  %v298_v32 = vrot.slane %v290_v19, 2  ;;  %v301_v28 = vrot.slane %v292_v15, 2 }
  0xb9   :  { %v190_v50 = vmul.f32 %v1109_v20, %v1230_v45  ;;  %v192_v51 = vmul.f32 %v1109_v20, %v1234_v31  ;;  %v105_v39 = vmul.f32 %v1111_v21, %v1228_v47  ;;  %v107_v8 = vmul.f32 %v1111_v21, %v1232_v41 }
  0xba   :  { %v270_v3 = vmul.f32 %v1124_v26, %v1230_v45  ;;  %v272_v58 = vmul.f32 %v1124_v26, %v1234_v31  ;;  %v302_v62 = vsel %vm133_vm1, %v298_v32, %v301_v28  ;;  %v106_v15 = vmul.f32 %v1111_v21, %v1230_v45 }
  0xbb   :  { %v204_v19 = vadd.f32 %v200_v24, %v190_v50  ;;  %v206_v49 = vadd.f32 %v200_v24, %v192_v51  ;;  %v119_v44 = vadd.f32 %v115_v25, %v105_v39  ;;  %v121_v52 = vadd.f32 %v115_v25, %v107_v8 }
  0xbc   :  { %v1588_v57 = vrot.slane %v1093_v14, 1  ;;  %v108_v56 = vmul.f32 %v1111_v21, %v1234_v31  ;;  %v1590_v50 = vrot.slane %v1103_v17, 1  ;;  %v128_v8 = vmul.f32 %v1100_v16, %v1208_v7 }
  0xbd   :  { %v228_v11 = vadd.f32 %v218_v9, %v204_v19  ;;  %v230_v24 = vadd.f32 %v222_v36, %v206_v49  ;;  %v144_v51 = vadd.f32 %v134_v61, %v119_v44  ;;  %v146_v54 = vadd.f32 %v137_v34, %v121_v52 }
  0xbe   :  { %v284_v28 = vadd.f32 %v1588_v57, %v270_v3  ;;  %v1589_v2 = vmov %v1588_v57  ;;  %v120_v55 = vadd.f32 %v1590_v50, %v106_v15  ;;  %v1591_v12 = vmov %v1590_v50 }
  0xbf   :  { %v286_v1 = vadd.f32 %v1589_v2, %v272_v58  ;;  %v122_v25 = vadd.f32 %v1591_v12, %v108_v56  ;;  %v238_v14 = vrot.slane %v228_v11, 7  ;;  %v239_v2 = vrot.slane %v230_v24, 7 }
  0xc0   :  { %v308_v39 = vadd.f32 %v298_v32, %v284_v28  ;;  %v153_v3 = vrot.slane %v144_v51, 7  ;;  %v154_v58 = vrot.slane %v146_v54, 7  ;;  %v135_v15 = vrot.slane %v126_v10, 2 }
  0xc1   :  { %v310_v0 = vadd.f32 %v302_v62, %v286_v1  ;;  %v138_v9 = vrot.slane %v128_v8, 2  ;;  %v240_v36 = vsel %vm152_vm2, %v238_v14, %v239_v2  ;;  %v350_v1 = vmul.f32 %v1143_v33, %v1230_v45 }
  0xc2   :  { %v318_v21 = vrot.slane %v308_v39, 7  ;;  %v155_v32 = vsel %vm152_vm2, %v153_v3, %v154_v58  ;;  %v352_v17 = vmul.f32 %v1143_v33, %v1234_v31  ;;  %245 = vrot.lane.b32.xlu0 %v240_v36, %s992_s11  ;;  %v145_v54 = vadd.f32 %v135_v15, %v120_v55 }
  0xc3   :  { %v319_v57 = vrot.slane %v310_v0, 7  ;;  %161 = vrot.lane.b32.xlu1 %v155_v32, %s993_s12  ;;  %v139_v34 = vsel %vm133_vm1, %v135_v15, %v138_v9  ;;  %v433_v56 = vstv %s1253_s10  ;;  %v1592_v0 = vrot.slane %v1106_v18, 1  ;;  %s837_s10 = sshll.u32 %s1000_s9, 4  ;;  %s838_s10 = int_to_ptr.vmem [resolvable:$true] %s837_s10 }
  0xc4   :  { %v147_v61 = vadd.f32 %v139_v34, %v122_v25  ;;  %v370_v49 = vmul.f32 %v1147_v35, %v1204_v5  ;;  %v156_v44 = vrot.slane %v145_v54, 7  ;;  %v372_v52 = vmul.f32 %v1147_v35, %v1208_v7  ;;  %p961_p5 = scmp.lt.s32.totalorder %s838_s10, %s838_s10 }
  0xc5   :  { %v320_v16 = vsel %vm152_vm2, %v318_v21, %v319_v57  ;;  %v364_v10 = vadd.f32 %v1592_v0, %v350_v1  ;;  %v1593_v62 = vmov %v1592_v0  ;;  %v189_v28 = vmul.f32 %v1109_v20, %v1228_v47 }
  0xc6   :  { %v366_v19 = vadd.f32 %v1593_v62, %v352_v17  ;;  %v191_v55 = vmul.f32 %v1109_v20, %v1232_v41  ;;  %v157_v50 = vrot.slane %v147_v61, 7  ;;  %v378_v11 = vrot.slane %v370_v49, 2  ;;  %325 = vrot.lane.b32.xlu0 %v320_v16, %s994_s13 }
  0xc7   :  { %v209_v24 = vmul.f32 %v1090_v13, %v1202_v4  ;;  %v211_v18 = vmul.f32 %v1090_v13, %v1206_v6  ;;  %v381_v51 = vrot.slane %v372_v52, 2  ;;  %v1594_v39 = vrot.slane %v1116_v23, 1 }
  0xc8   :  { %v487_v20 = vmul.f32 %v1158_v40, %v1230_v45  ;;  %v158_v14 = vsel %vm152_vm2, %v156_v44, %v157_v50  ;;  %v388_v2 = vadd.f32 %v378_v11, %v364_v10  ;;  %v489_v21 = vmul.f32 %v1158_v40, %v1234_v31 }
  0xc9   :  { %v203_v12 = vadd.f32 %v1594_v39, %v189_v28  ;;  %v1595_v25 = vmov %v1594_v39  ;;  %v217_v3 = vrot.slane %v209_v24, 2  ;;  %v219_v58 = vrot.slane %v211_v18, 2  ;;  %163 = vrot.lane.b32.xlu1 %v158_v14, %s993_s12 }
  0xca   :  { %v205_v8 = vadd.f32 %v1595_v25, %v191_v55  ;;  %v382_v13 = vsel %vm133_vm1, %v378_v11, %v381_v51  ;;  %v1596_v57 = vrot.slane %v1127_v27, 1  ;;  %v507_v23 = vmul.f32 %v1151_v37, %v1204_v5 }
  0xcb   :  { %v390_v9 = vadd.f32 %v382_v13, %v366_v19  ;;  %v398_v36 = vrot.slane %v388_v2, 7  ;;  %v220_v32 = vsel %vm133_vm1, %v217_v3, %v219_v58  ;;  %v227_v1 = vadd.f32 %v217_v3, %v203_v12 }
  0xcc   :  { %v501_v15 = vadd.f32 %v1596_v57, %v487_v20  ;;  %v229_v17 = vadd.f32 %v220_v32, %v205_v8  ;;  %v1597_v16 = vmov %v1596_v57  ;;  %v509_v54 = vmul.f32 %v1151_v37, %v1208_v7 }
  0xcd   :  { %v503_v34 = vadd.f32 %v1597_v16, %v489_v21  ;;  %v515_v61 = vrot.slane %v507_v23, 2  ;;  %v399_v0 = vrot.slane %v390_v9, 7  ;;  %v235_v10 = vrot.slane %v227_v1, 7 }
  0xce   :  { %v269_v62 = vmul.f32 %v1124_v26, %v1228_v47  ;;  %v271_v19 = vmul.f32 %v1124_v26, %v1232_v41  ;;  %v236_v49 = vrot.slane %v229_v17, 7  ;;  %v518_v44 = vrot.slane %v509_v54, 2 }
  0xcf   :  { %v525_v52 = vadd.f32 %v515_v61, %v501_v15  ;;  %v289_v28 = vmul.f32 %v1113_v22, %v1202_v4  ;;  %v400_v27 = vsel %vm152_vm2, %v398_v36, %v399_v0  ;;  %v1598_v55 = vrot.slane %v1135_v29, 1 }
  0xd0   :  { %v291_v18 = vmul.f32 %v1113_v22, %v1206_v6  ;;  %405 = vrot.lane.b32.xlu0 %v400_v27, %s995_s14  ;;  %v237_v26 = vsel %vm152_vm2, %v235_v10, %v236_v49  ;;  %v519_v51 = vsel %vm133_vm1, %v515_v61, %v518_v44  ;;  %v567_v29 = vmul.f32 %v1169_v46, %v1230_v45 }
  0xd1   :  { %v283_v50 = vadd.f32 %v1598_v55, %v269_v62  ;;  %v1599_v11 = vmov %v1598_v55  ;;  %v535_v39 = vrot.slane %v525_v52, 7  ;;  %v297_v12 = vrot.slane %v289_v28, 2  ;;  %243 = vrot.lane.b32.xlu1 %v237_v26, %s992_s11  ;;  %s956_s11 = scalar_lea.vmem %s838_s10, 256 }
  0xd2   :  { %v285_v24 = vadd.f32 %v1599_v11, %v271_v19  ;;  %v527_v25 = vadd.f32 %v519_v51, %v503_v34  ;;  %v299_v8 = vrot.slane %v291_v18, 2  ;;  %v569_v20 = vmul.f32 %v1169_v46, %v1234_v31  ;;  %p957_p4 = scmp.ne.s32.totalorder %s838_s10, %s956_s11  ;;  %p962_p6 = scmp.lt.s32.totalorder %s956_s11, %s956_s11 }
  0xd3   :  { %v307_v22 = vadd.f32 %v297_v12, %v283_v50  ;;  %v587_v14 = vmul.f32 %v1173_v48, %v1204_v5  ;;  %v589_v2 = vmul.f32 %v1173_v48, %v1208_v7  ;;  %v349_v3 = vmul.f32 %v1143_v33, %v1228_v47 }
  0xd4   :  { %v536_v58 = vrot.slane %v527_v25, 7  ;;  %v300_v13 = vsel %vm133_vm1, %v297_v12, %v299_v8  ;;  %v1600_v21 = vrot.slane %v1138_v30, 1  ;;  %v351_v16 = vmul.f32 %v1143_v33, %v1232_v41  ;;  %p963_p7 = por %p962_p6, %p961_p5 }
  0xd5   :  { %v309_v9 = vadd.f32 %v300_v13, %v285_v24  ;;  %v315_v36 = vrot.slane %v307_v22, 7  ;;  %v595_v32 = vrot.slane %v587_v14, 2  ;;  %v598_v1 = vrot.slane %v589_v2, 2 }
  0xd6   :  { %v581_v57 = vadd.f32 %v1600_v21, %v567_v29  ;;  %v1601_v15 = vmov %v1600_v21  ;;  %v537_v17 = vsel %vm152_vm2, %v535_v39, %v536_v58  ;;  %v1602_v34 = vrot.slane %v1154_v38, 1  ;;  %p964_p8 = pnand %p963_p7, %p957_p4 }
  0xd7   :  { %v583_v23 = vadd.f32 %v1601_v15, %v569_v20  ;;  %v369_v61 = vmul.f32 %v1147_v35, %v1202_v4  ;;  %542 = vrot.lane.b32.xlu0 %v537_v17, %s996_s2  ;;  %v316_v30 = vrot.slane %v309_v9, 7  ;;  %v599_v0 = vsel %vm133_vm1, %v595_v32, %v598_v1 }
  0xd8   :  { %v363_v54 = vadd.f32 %v1602_v34, %v349_v3  ;;  %v605_v10 = vadd.f32 %v595_v32, %v581_v57  ;;  %v371_v62 = vmul.f32 %v1147_v35, %v1206_v6  ;;  %v1603_v49 = vmov %v1602_v34 }
  0xd9   :  { %v607_v19 = vadd.f32 %v599_v0, %v583_v23  ;;  %v365_v33 = vadd.f32 %v1603_v49, %v351_v16  ;;  %v377_v44 = vrot.slane %v369_v61, 2  ;;  %v647_v52 = vmul.f32 %v1189_v59, %v1230_v45 }
  0xda   :  { %v317_v28 = vsel %vm152_vm2, %v315_v36, %v316_v30  ;;  %v615_v27 = vrot.slane %v605_v10, 7  ;;  %v379_v55 = vrot.slane %v371_v62, 2  ;;  %v649_v50 = vmul.f32 %v1189_v59, %v1234_v31 }
  0xdb   :  { %323 = vrot.lane.b32.xlu1 %v317_v28, %s994_s13  ;;  %v616_v11 = vrot.slane %v607_v19, 7  ;;  %v387_v24 = vadd.f32 %v377_v44, %v363_v54  ;;  %v1604_v35 = vrot.slane %v1162_v42, 1  ;;  %v667_v38 = vmul.f32 %v1192_v60, %v1204_v5 }
  0xdc   :  { %v380_v26 = vsel %vm133_vm1, %v377_v44, %v379_v55  ;;  %v669_v12 = vmul.f32 %v1192_v60, %v1208_v7  ;;  %v486_v25 = vmul.f32 %v1158_v40, %v1228_v47  ;;  %v488_v2 = vmul.f32 %v1158_v40, %v1232_v41 }
  0xdd   :  { %v661_v18 = vadd.f32 %v1604_v35, %v647_v52  ;;  %v1605_v51 = vmov %v1604_v35  ;;  %v617_v8 = vsel %vm152_vm2, %v615_v27, %v616_v11  ;;  %v389_v29 = vadd.f32 %v380_v26, %v365_v33 }
  0xde   :  { %v663_v39 = vadd.f32 %v1605_v51, %v649_v50  ;;  %v395_v20 = vrot.slane %v387_v24, 7  ;;  %v675_v22 = vrot.slane %v667_v38, 2  ;;  %622 = vrot.lane.b32.xlu0 %v617_v8, %s997_s4  ;;  %v678_v14 = vrot.slane %v669_v12, 2  ;;  %v1611_v50 = vld [vmem:[#allocation17_spill] sm:$0xff] }
  0xdf   :  { %v1606_v42 = vrot.slane %v1165_v43, 1  ;;  %v506_v58 = vmul.f32 %v1151_v37, %v1202_v4  ;;  %v396_v13 = vrot.slane %v389_v29, 7  ;;  %v508_v57 = vmul.f32 %v1151_v37, %v1206_v6  ;;  %v1610_v43 = vld [vmem:[#allocation20_spill] sm:$0xff] }
  0xe0   :  { %v685_v21 = vadd.f32 %v675_v22, %v661_v18  ;;  %v727_v15 = vmul.f32 %v1197_v63, %v1230_v45  ;;  %v679_v23 = vsel %vm133_vm1, %v675_v22, %v678_v14  ;;  %v729_v32 = vmul.f32 %v1197_v63, %v1234_v31 }
  0xe1   :  { %v500_v3 = vadd.f32 %v1606_v42, %v486_v25  ;;  %v1607_v9 = vmov %v1606_v42  ;;  %v514_v40 = vrot.slane %v506_v58, 2  ;;  %v397_v1 = vsel %vm152_vm2, %v395_v20, %v396_v13  ;;  %v1614_v42 = vld [vmem:[#allocation18_spill] sm:$0xff] }
  0xe2   :  { %v502_v36 = vadd.f32 %v1607_v9, %v488_v2  ;;  %v687_v17 = vadd.f32 %v679_v23, %v663_v39  ;;  %v695_v16 = vrot.slane %v685_v21, 7  ;;  %v516_v34 = vrot.slane %v508_v57, 2  ;;  %403 = vrot.lane.b32.xlu1 %v397_v1, %s995_s14 }
  0xe3   :  { %v524_v37 = vadd.f32 %v514_v40, %v500_v3  ;;  %v1608_v54 = vrot.slane %v1176_v53, 1  ;;  %v747_v10 = vmul.f32 %v1610_v43, %v1204_v5  ;;  %v749_v49 = vmul.f32 %v1610_v43, %v1208_v7 }
  0xe4   :  { %v696_v62 = vrot.slane %v687_v17, 7  ;;  %v517_v19 = vsel %vm133_vm1, %v514_v40, %v516_v34  ;;  %v566_v33 = vmul.f32 %v1169_v46, %v1228_v47  ;;  %v568_v27 = vmul.f32 %v1169_v46, %v1232_v41 }
  0xe5   :  { %v741_v61 = vadd.f32 %v1608_v54, %v727_v15  ;;  %v1609_v30 = vmov %v1608_v54  ;;  %v526_v44 = vadd.f32 %v517_v19, %v502_v36  ;;  %v532_v52 = vrot.slane %v524_v37, 7 }
  0xe6   :  { %v743_v0 = vadd.f32 %v1609_v30, %v729_v32  ;;  %v755_v28 = vrot.slane %v747_v10, 2  ;;  %v697_v53 = vsel %vm152_vm2, %v695_v16, %v696_v62  ;;  %v758_v55 = vrot.slane %v749_v49, 2  ;;  %v1617_v16 = vld [vmem:[#allocation19_spill] sm:$0xff] }
  0xe7   :  { %v1612_v11 = vrot.slane %v1611_v50, 1  ;;  %v586_v35 = vmul.f32 %v1173_v48, %v1202_v4  ;;  %702 = vrot.lane.b32.xlu0 %v697_v53, %s998_s15  ;;  %v533_v18 = vrot.slane %v526_v44, 7  ;;  %v588_v46 = vmul.f32 %v1173_v48, %v1206_v6 }
  0xe8   :  { %v765_v38 = vadd.f32 %v755_v28, %v741_v61  ;;  %v759_v39 = vsel %vm133_vm1, %v755_v28, %v758_v55  ;;  %v646_v25 = vmul.f32 %v1189_v59, %v1228_v47  ;;  %v648_v8 = vmul.f32 %v1189_v59, %v1232_v41 }
  0xe9   :  { %v580_v24 = vadd.f32 %v1612_v11, %v566_v33  ;;  %v1613_v26 = vmov %v1612_v11  ;;  %v594_v12 = vrot.slane %v586_v35, 2  ;;  %v534_v29 = vsel %vm152_vm2, %v532_v52, %v533_v18  ;;  %v1621_v33 = vld [vmem:[#allocation16_spill] sm:$0xff] }
  0xea   :  { %v582_v51 = vadd.f32 %v1613_v26, %v568_v27  ;;  %v767_v20 = vadd.f32 %v759_v39, %v743_v0  ;;  %v775_v22 = vrot.slane %v765_v38, 7  ;;  %v596_v14 = vrot.slane %v588_v46, 2  ;;  %540 = vrot.lane.b32.xlu1 %v534_v29, %s996_s2  ;;  %v1619_v0 = vld [vmem:[#allocation15_spill] sm:$0xff] }
  0xeb   :  { %v604_v2 = vadd.f32 %v594_v12, %v580_v24  ;;  %v1615_v3 = vrot.slane %v1614_v42, 1  ;;  %v666_v21 = vmul.f32 %v1192_v60, %v1202_v4  ;;  %v668_v15 = vmul.f32 %v1192_v60, %v1206_v6 }
  0xec   :  { %v776_v59 = vrot.slane %v767_v20, 7  ;;  %v597_v57 = vsel %vm133_vm1, %v594_v12, %v596_v14  ;;  %v726_v23 = vmul.f32 %v1197_v63, %v1228_v47  ;;  %v728_v32 = vmul.f32 %v1197_v63, %v1232_v41 }
  0xed   :  { %v660_v48 = vadd.f32 %v1615_v3, %v646_v25  ;;  %v1616_v58 = vmov %v1615_v3  ;;  %v606_v9 = vadd.f32 %v597_v57, %v582_v51  ;;  %v612_v36 = vrot.slane %v604_v2, 7 }
  0xee   :  { %v662_v13 = vadd.f32 %v1616_v58, %v648_v8  ;;  %v674_v40 = vrot.slane %v666_v21, 2  ;;  %v777_v1 = vsel %vm152_vm2, %v775_v22, %v776_v59  ;;  %v676_v17 = vrot.slane %v668_v15, 2 }
  0xef   :  { %v1618_v34 = vrot.slane %v1617_v16, 1  ;;  %v746_v60 = vmul.f32 %v1610_v43, %v1202_v4  ;;  %782 = vrot.lane.b32.xlu0 %v777_v1, %s999_s18  ;;  %v613_v54 = vrot.slane %v606_v9, 7  ;;  %v748_v30 = vmul.f32 %v1610_v43, %v1206_v6 }
  0xf0   :  { %v684_v61 = vadd.f32 %v674_v40, %v660_v48  ;;  %v434_v63 = vmul.f32 %v433_v56, %v1619_v0  ;;  %v677_v10 = vsel %vm133_vm1, %v674_v40, %v676_v17  ;;  %v435_v44 = vmul.f32 %v433_v56, %v1621_v33  ;;  %v855_v0 = vld [vmem:[%s1568_s3 + $0x2] ss:$8 sm:$0x3] }
  0xf1   :  { %v740_v37 = vadd.f32 %v1618_v34, %v726_v23  ;;  %v1620_v62 = vmov %v1618_v34  ;;  %v754_v49 = vrot.slane %v746_v60, 2  ;;  %v614_v52 = vsel %vm152_vm2, %v612_v36, %v613_v54 }
  0xf2   :  { %v742_v19 = vadd.f32 %v1620_v62, %v728_v32  ;;  %v686_v28 = vadd.f32 %v677_v10, %v662_v13  ;;  %v692_v27 = vrot.slane %v684_v61, 7  ;;  %v756_v53 = vrot.slane %v748_v30, 2  ;;  %620 = vrot.lane.b32.xlu1 %v614_v52, %s997_s4  ;;  %v851_v61 = vld [vmem:[%s1568_s3 + $0x4] ss:$8 sm:$0x3] }
  0xf3   :  { %v764_v43 = vadd.f32 %v754_v49, %v740_v37  ;;  %v427_v24 = vstv %s863_s17  ;;  %v447_v35 = vstv %s1438_s16  ;;  %v438_v26 = vrot.slane %v434_v63, 1 }
  0xf4   :  { %v693_v55 = vrot.slane %v686_v28, 7  ;;  %v757_v50 = vsel %vm133_vm1, %v754_v49, %v756_v53  ;;  %v439_v51 = vrot.slane %v435_v44, 1  ;;  %v428_v46 = vmul.f32 %v427_v24, %v1228_v47 }
  0xf5   :  { %v766_v11 = vadd.f32 %v757_v50, %v742_v19  ;;  %v772_v38 = vrot.slane %v764_v43, 7  ;;  %v429_v39 = vmul.f32 %v427_v24, %v1230_v45  ;;  %v430_v12 = vmul.f32 %v427_v24, %v1232_v41  ;;  %v859_v19 = vld [vmem:[%s1568_s3 + $0x5] ss:$8 sm:$0x3] }
  0xf6   :  { %v694_v18 = vsel %vm152_vm2, %v692_v27, %v693_v55  ;;  %v431_v25 = vmul.f32 %v427_v24, %v1234_v31  ;;  %v448_v8 = vmul.f32 %v447_v35, %v1202_v4  ;;  %v449_v29 = vmul.f32 %v447_v35, %v1204_v5  ;;  %v410_v43 = vld [vmem:[%s1568_s3] ss:$8 sm:$0x3] }
  0xf7   :  { %700 = vrot.lane.b32.xlu1 %v694_v18, %s998_s15  ;;  %v773_v56 = vrot.slane %v766_v11, 7  ;;  %v442_v22 = vadd.f32 %v438_v26, %v428_v46  ;;  %v443_v14 = vadd.f32 %v439_v51, %v429_v39  ;;  %v450_v2 = vmul.f32 %v447_v35, %v1206_v6 }
  0xf8   :  { %v444_v42 = vadd.f32 %v438_v26, %v430_v12  ;;  %v451_v47 = vmul.f32 %v447_v35, %v1208_v7  ;;  %v456_v45 = vrot.slane %v448_v8, 2  ;;  %v457_v3 = vrot.slane %v449_v29, 2 }
  0xf9   :  { %v774_v20 = vsel %vm152_vm2, %v772_v38, %v773_v56  ;;  %v445_v41 = vadd.f32 %v439_v51, %v431_v25  ;;  %v458_v48 = vrot.slane %v450_v2, 2  ;;  %v1622_v1 = vlaneseq }
  0xfa   :  { %v460_v31 = vrot.slane %v451_v47, 2  ;;  %v466_v58 = vadd.f32 %v456_v45, %v442_v22  ;;  %v467_v4 = vadd.f32 %v457_v3, %v443_v14  ;;  %v102_v35 = vstv %s1496_s19 }
  0xfb   :  { %780 = vrot.lane.b32.xlu1 %v774_v20, %s999_s18  ;;  %v459_v5 = vsel %vm133_vm1, %v456_v45, %v458_v48  ;;  %v174_v17 = vshrl.u32 %v1622_v1, 7  ;;  %v1490_v37 = vand.u32 127, %v1622_v1  ;;  %v869_v45 = vld [vmem:[%s1568_s3 + $0x1] ss:$8 sm:$0x3] }
  0xfc   :  { %v461_v13 = vsel %vm133_vm1, %v457_v3, %v460_v31  ;;  %v468_v21 = vadd.f32 %v459_v5, %v444_v42  ;;  %v474_v59 = vrot.slane %v466_v58, 7  ;;  %v477_v6 = vrot.slane %v467_v4, 7  ;;  %v873_v4 = vld [vmem:[%s1568_s3 + $0x6] ss:$8 sm:$0x3] }
  0xfd   :  { %v469_v57 = vadd.f32 %v461_v13, %v445_v41  ;;  %v1492_v60 = vsub.s32 0, %v174_v17  ;;  %v1494_v54 = vsub.s32 1, %v174_v17  ;;  %vm167_vm3 = vcmp.lt.s32.totalorder %v1490_v37, 17 }
  0xfe   :  { %v475_v15 = vrot.slane %v468_v21, 7  ;;  %vm247_vm4 = vcmp.lt.s32.totalorder %v1490_v37, 16  ;;  %vm327_vm5 = vcmp.lt.s32.totalorder %v1490_v37, 15  ;;  %vm407_vm6 = vcmp.lt.s32.totalorder %v1490_v37, 1 }
  0xff   :  { %v478_v23 = vrot.slane %v469_v57, 7  ;;  %v176_v63 = vrot.slane %v851_v61, %v1492_v60  ;;  %v180_v10 = vrot.slane %v851_v61, %v1494_v54  ;;  %v256_v44 = vrot.slane %v855_v0, %v1492_v60 }
 0x100   :  { %v1483_v9 = vsel %vm152_vm2, %v474_v59, %v475_v15  ;;  %v260_v52 = vrot.slane %v855_v0, %v1494_v54  ;;  %v336_v53 = vrot.slane %v859_v19, %v1492_v60  ;;  %v340_v11 = vrot.slane %v859_v19, %v1494_v54  ;;  %v877_v59 = vld [vmem:[%s1568_s3 + $0x3] ss:$8 sm:$0x3] }
 0x101   :  { %v1486_v7 = vsel %vm152_vm2, %v477_v6, %v478_v23  ;;  %v415_v46 = vrot.slane %v410_v43, %v1492_v60  ;;  %v419_v39 = vrot.slane %v410_v43, %v1494_v54  ;;  %vm544_vm7 = vcmp.lt.s32.totalorder %v1490_v37, 127 }
 0x102   :  { %v553_v58 = vrot.slane %v869_v45, %v1492_v60  ;;  %v557_v21 = vrot.slane %v869_v45, %v1494_v54  ;;  %vm624_vm8 = vcmp.lt.s32.totalorder %v1490_v37, 113  ;;  %v633_v15 = vrot.slane %v873_v4, %v1492_v60 }
 0x103   :  { %v637_v23 = vrot.slane %v873_v4, %v1494_v54  ;;  %vm704_vm9 = vcmp.lt.s32.totalorder %v1490_v37, 112  ;;  %v713_v1 = vrot.slane %v877_v59, %v1492_v60  ;;  %v717_v17 = vrot.slane %v877_v59, %v1494_v54  ;;  %v909_v59 = vld [vmem:[#allocation2 + $0x18] sm:$0xff] }
 0x104   :  { %vm784_vm10 = vcmp.lt.s32.totalorder %v1490_v37, 111 }
 0x134   :  { %v246_v32 = vpop.permute.xlu0 %245 }
 0x135   :  { %v162_v36 = vpop.permute.xlu1 %161 }
 0x138   :  { %v326_v34 = vpop.permute.xlu0 %325 }
 0x13b   :  { %v164_v40 = vpop.permute.xlu1 %163 }
 0x13c   :  { %v168_v49 = vsel %vm167_vm3, %v162_v36, %v164_v40  ;;  %v169_v33 = vsel %vm167_vm3, %v164_v40, %v162_v36 }
 0x13d   :  { %v183_v55 = vmul.f32 %v176_v63, %v169_v33  ;;  %v184_v50 = vmul.f32 %v180_v10, %v168_v49  ;;  %v881_v63 = vld [vmem:[%s1568_s3 + $0x7] ss:$8 sm:$0x3]  ;;  %s848_s3 = sld [smem:[#allocation7 + $0x1]] }
 0x13f   :  { %v185_v8 = vadd.f32 %v183_v55, %v102_v35  ;;  %v186_v29 = vadd.f32 %v184_v50, %v102_v35 }
 0x142   :  { %v406_v62 = vpop.permute.xlu0 %405 }
 0x143   :  { %v244_v16 = vpop.permute.xlu1 %243 }
 0x144   :  { %v248_v28 = vsel %vm247_vm4, %v244_v16, %v246_v32  ;;  %v249_v27 = vsel %vm247_vm4, %v246_v32, %v244_v16 }
 0x145   :  { %v263_v26 = vmul.f32 %v256_v44, %v249_v27  ;;  %v264_v51 = vmul.f32 %v260_v52, %v248_v28 }
 0x147   :  { %v265_v14 = vadd.f32 %v263_v26, %v185_v8  ;;  %v266_v2 = vadd.f32 %v264_v51, %v186_v29 }
 0x149   :  { %v543_v56 = vpop.permute.xlu0 %542 }
 0x14d   :  { %v324_v30 = vpop.permute.xlu1 %323 }
 0x14e   :  { %v328_v18 = vsel %vm327_vm5, %v324_v30, %v326_v34  ;;  %v329_v38 = vsel %vm327_vm5, %v326_v34, %v324_v30 }
 0x14f   :  { %v343_v20 = vmul.f32 %v336_v53, %v329_v38  ;;  %v344_v22 = vmul.f32 %v340_v11, %v328_v18 }
 0x150   :  { %v623_v31 = vpop.permute.xlu0 %622 }
 0x151   :  { %v345_v41 = vadd.f32 %v343_v20, %v265_v14  ;;  %v346_v48 = vadd.f32 %v344_v22, %v266_v2 }
 0x154   :  { %v404_v24 = vpop.permute.xlu1 %403 }
 0x155   :  { %v408_v12 = vsel %vm407_vm6, %v404_v24, %v406_v62  ;;  %v409_v25 = vsel %vm407_vm6, %v406_v62, %v404_v24 }
 0x156   :  { %v422_v42 = vmul.f32 %v415_v46, %v409_v25  ;;  %v423_v47 = vmul.f32 %v419_v39, %v408_v12 }
 0x158   :  { %v424_v5 = vadd.f32 %v422_v42, %v345_v41  ;;  %v425_v13 = vadd.f32 %v423_v47, %v346_v48 }
 0x159   :  { %v703_v16 = vpop.permute.xlu0 %702 }
 0x15a   :  { %v482_v34 = vadd.f32 %v1483_v9, %v424_v5  ;;  %v483_v61 = vadd.f32 %v1486_v7, %v425_v13  ;;  %v793_v9 = vrot.slane %v881_v63, %v1492_v60  ;;  %v797_v7 = vrot.slane %v881_v63, %v1494_v54  ;;  %v908_v13 = vld [vmem:[#allocation2 + $0x10] sm:$0xff] }
 0x15c   :  { %v541_v3 = vpop.permute.xlu1 %540 }
 0x15d   :  { %v545_v57 = vsel %vm544_vm7, %v541_v3, %v543_v56  ;;  %v546_v6 = vsel %vm544_vm7, %v543_v56, %v541_v3  ;;  %v822_v3 = vstv %s848_s3 }
 0x15e   :  { %v560_v30 = vmul.f32 %v553_v58, %v545_v57  ;;  %v561_v0 = vmul.f32 %v557_v21, %v546_v6 }
 0x160   :  { %v562_v44 = vadd.f32 %v560_v30, %v482_v34  ;;  %v563_v52 = vadd.f32 %v561_v0, %v483_v61 }
 0x161   :  { %v783_v53 = vpop.permute.xlu0 %782 }
 0x164   :  { %v621_v36 = vpop.permute.xlu1 %620 }
 0x165   :  { %v625_v40 = vsel %vm624_vm8, %v621_v36, %v623_v31  ;;  %v626_v32 = vsel %vm624_vm8, %v623_v31, %v621_v36 }
 0x166   :  { %v640_v10 = vmul.f32 %v633_v15, %v625_v40  ;;  %v641_v62 = vmul.f32 %v637_v23, %v626_v32 }
 0x168   :  { %v642_v43 = vadd.f32 %v640_v10, %v562_v44  ;;  %v643_v55 = vadd.f32 %v641_v62, %v563_v52 }
 0x169   :  { %v701_v19 = vpop.permute.xlu1 %700 }
 0x16a   :  { %v705_v49 = vsel %vm704_vm9, %v701_v19, %v703_v16  ;;  %v706_v33 = vsel %vm704_vm9, %v703_v16, %v701_v19 }
 0x16b   :  { %v720_v28 = vmul.f32 %v713_v1, %v705_v49  ;;  %v721_v27 = vmul.f32 %v717_v17, %v706_v33 }
 0x16d   :  { %v781_v50 = vpop.permute.xlu1 %780  ;;  %v722_v35 = vadd.f32 %v720_v28, %v642_v43  ;;  %v723_v18 = vadd.f32 %v721_v27, %v643_v55 }
 0x16e   :  { %v785_v11 = vsel %vm784_vm10, %v781_v50, %v783_v53  ;;  %v786_v24 = vsel %vm784_vm10, %v783_v53, %v781_v50 }
 0x16f   :  { %v800_v38 = vmul.f32 %v793_v9, %v785_v11  ;;  %v801_v26 = vmul.f32 %v797_v7, %v786_v24 }
 0x171   :  { %v802_v37 = vadd.f32 %v800_v38, %v722_v35  ;;  %v803_v51 = vadd.f32 %v801_v26, %v723_v18 }
 0x173   :  { %v804_v56 = vmax.f32 %v802_v37, -60.0  ;;  %v805_v60 = vmax.f32 %v803_v51, -60.0 }
 0x175   :  { %v806_v46 = vsub.f32 0.0, %v804_v56  ;;  %v807_v54 = vsub.f32 0.0, %v805_v60 }
 0x177   :  { %v808_v39 = vmul.f32 1.442695, %v806_v46  ;;  %v810_v12 = vmul.f32 1.442695, %v807_v54 }
 0x179   :  { %900 = vpow2.f32 %v808_v39 }
 0x17a   :  { %902 = vpow2.f32 %v810_v12 }
 0x183   :  { %v901_v25 = vpop.eup %900 }
 0x184   :  { %v903_v8 = vpop.eup %902  ;;  %v812_v29 = vadd.f32 1.0, %v901_v25 }
 0x185   :  { %v813_v20 = vadd.f32 1.0, %v903_v8 }
 0x186   :  { %904 = vrcp.f32 %v812_v29 }
 0x187   :  { %906 = vrcp.f32 %v813_v20 }
 0x190   :  { %v905_v22 = vpop.eup %904 }
 0x191   :  { %v907_v14 = vpop.eup %906  ;;  %v816_v2 = vmul.f32 %v905_v22, %v812_v29 }
 0x192   :  { %v817_v42 = vmul.f32 %v907_v14, %v813_v20 }
 0x193   :  { %v818_v47 = vsub.f32 2.0, %v816_v2 }
 0x194   :  { %v819_v45 = vsub.f32 2.0, %v817_v42 }
 0x195   :  { %v820_v41 = vmul.f32 %v905_v22, %v818_v47 }
 0x196   :  { %v821_v48 = vmul.f32 %v907_v14, %v819_v45 }
 0x197   :  { %v823_v31 = vmul.f32 %v822_v3, %v820_v41 }
 0x198   :  { %v824_v58 = vmul.f32 %v822_v3, %v821_v48 }
 0x199   :  { %v825_v4 = vadd.f32 1.0, %v823_v31 }
 0x19a   :  { %v826_v5 = vadd.f32 1.0, %v824_v58 }
 0x19b   :  { %v827_v21 = vmul.f32 %v908_v13, %v825_v4 }
 0x19c   :  { %v828_v57 = vmul.f32 %v909_v59, %v826_v5 }
 0x19d   :  { %829 = vst [vmem:[#allocation10] sm:$0xff] %v827_v21 }
 0x19e   :  { %830 = vst [vmem:[#allocation10 + $0x8] sm:$0xff] %v828_v57 }
 0x19f   :  { %967 = shalt.err (!%p964_p8)
}
 0x1a0   :  { %s968_s14 = scalar_lea.hbm %s1570_s5, 256 }
 0x1a1   :  { %p969_p9 = scmp.ne.s32.totalorder %s1570_s5, %s968_s14  ;;  %p972_p10 = scmp.lt.u32.totalorder %s968_s14, %s1570_s5 }
 0x1a3   :  { %p974_p11 = pnand %p972_p10, %p969_p9 }
 0x1a5   :  { %977 = shalt.err (!%p974_p11)
}
 0x1a6   :  { %840 = dma.vmem_to_hbm [thread:$0]  %s838_s10, 256, %s1570_s5, [#allocation5]  }
 0x1a7   :  { %984 = dma.done.wait [#allocation5], 256  }
 0x1a8   :  { %985 = vsyncadd [#allocation5], 4294967040 }
 0x1a9   :  { %844 = vsyncpa [#allocation4], 1 }
 0x1aa   :  { %845 = vsyncpa [#allocation5], 1 }
 0x1ab   :  { %846 = vsyncpa [#allocation6], 1 }
 0x1ac   :  { %847 = vsyncpa [#allocation8], 1 }

</bundles_post_ra>
